<compile_context>
chip_gen: v7x
topology: tpu7x:2x2x1
jax: 0.10.0
libtpu: 0.0.40
codegen_flags: <defaults>
</compile_context>

<pallas_src>
import functools

import jax
import jax.numpy as jnp
from jax import lax
from jax.experimental import pallas as pl
from jax.experimental.pallas import tpu as pltpu

LN_EPS = 1e-5  # matches torch.nn.LayerNorm default
_MIB = 1024 * 1024


# ----------------------------------------------------------------------------- helpers


def _vmem_capacity_bytes():
    """Physical VMEM of the current chip; conservative fallback if unknown."""
    try:
        return int(pltpu.get_tpu_info().vmem_capacity_bytes)
    except Exception:
        return 64 * _MIB  # v7x per-TensorCore VMEM (smallest of the targets)


def _layer_norm_f32(x_f32, gamma_f32, beta_f32):
    """Centered-variance LayerNorm in f32 (closer to torch's two-pass LN)."""
    inv_d = 1.0 / x_f32.shape[-1]
    mean = jnp.sum(x_f32, axis=-1, keepdims=True) * inv_d
    xc = x_f32 - mean
    var = jnp.sum(xc * xc, axis=-1, keepdims=True) * inv_d
    return xc * lax.rsqrt(var + LN_EPS) * gamma_f32 + beta_f32


# ----------------------------------------------------------------------------- kernels


def _nrb_kernel_full(x_ref, gamma_ref, beta_ref, w_ref, b_ref, o_ref):
    """Full-weight-resident path (n_tiles == 1): 1-D grid over row tiles."""
    x = x_ref[...].astype(jnp.float32)                               # (tm, D)
    xn = _layer_norm_f32(x, gamma_ref[...].astype(jnp.float32),
                         beta_ref[...].astype(jnp.float32))
    y = jnp.dot(xn.astype(w_ref.dtype), w_ref[...],
                preferred_element_type=jnp.float32)
    y = y + b_ref[...].astype(jnp.float32)
    # dropout: eval-mode identity.
    # TODO(synk): training-mode dropout (stochastic masking) not implemented.
    o_ref[...] = (x + y).astype(o_ref.dtype)


def _nrb_kernel_tiled(x_ref, res_ref, gamma_ref, beta_ref, w_ref, b_ref,
                      o_ref, xn_ref):
    """N-tiled weight path: LN hoisted out of the inner j loop into xn_ref."""
    j = pl.program_id(1)

    @pl.when(j == 0)
    def _():
        x = x_ref[...].astype(jnp.float32)                           # (tm, D)
        xn = _layer_norm_f32(x, gamma_ref[...].astype(jnp.float32),
                             beta_ref[...].astype(jnp.float32))
        xn_ref[...] = xn.astype(xn_ref.dtype)                        # bf16 scratch

    # MXU: (tm, D) @ (D, tn), f32 accumulation.
    y = jnp.dot(xn_ref[...], w_ref[...], preferred_element_type=jnp.float32)
    y = y + b_ref[...].astype(jnp.float32)

    # dropout: eval-mode identity; residual comes from the (tm, tn) view of x.
    o_ref[...] = (res_ref[...].astype(jnp.float32) + y).astype(o_ref.dtype)


# ----------------------------------------------------------------------------- tiling


def _select_tiles(M, D, x_el, out_el, w_el, budget):
    """Pick (tm, tn, n_tiles, vmem_need) against an explicit VMEM budget.

    Charges: double-buffered x / residual / out blocks, the weight (single
    buffer when fully resident, double otherwise), the (tm, D) LN scratch in
    the tiled path, and ~3x tm*D f32 in-kernel temporaries.
    Shrinks tn before letting tm fall below 256 (MXU is 256-wide on v6e/v7x).
    """
    F32 = 4
    tm_cands = [c for c in (1024, 768, 512, 384, 256, 128, 64, 32, 16, 8)
                if M % c == 0]
    if not tm_cands:
        tm_cands = [8]  # caller guarantees M % 8 == 0

    def need(tm, tn, n_tiles):
        if n_tiles == 1:
            w_res, ln_scratch, res_view = D * D * w_el, 0, 0
        else:
            w_res = 2 * D * tn * w_el          # double-buffered weight tile
            ln_scratch = tm * D * w_el         # bf16 xn scratch
            res_view = 2 * tm * tn * x_el      # residual view of x
        temps = 3 * tm * D * F32               # x, (x - mean), xn in f32
        io = 2 * tm * D * x_el + 2 * tm * tn * out_el
        return w_res + ln_scratch + res_view + temps + io

    # Path 1: keep the whole (D, D) weight resident (single-buffered).
    full_w_thresh = min(budget // 2, 48 * _MIB)
    if D * D * w_el <= full_w_thresh:
        for tm in tm_cands:
            n = need(tm, D, 1)
            if n <= budget:
                return tm, D, 1, n

    # Path 2: N-tile the weight in lane-aligned chunks.
    tn_cands = [c for c in (1024, 512, 256, 128) if D % c == 0]
    if not tn_cands:
        tn_cands = [D]  # D not 128-aligned (tiny / odd D): keep full width
    best = None
    for tn in tn_cands:
        n_tiles = D // tn
        fit_tm = None
        for tm in tm_cands:            # descending: first fit is the largest
            if need(tm, tn, n_tiles) <= budget:
                fit_tm = tm
                break
        if fit_tm is None:
            continue
        if fit_tm >= 256 or fit_tm >= M:   # good enough: take it now
            return fit_tm, tn, n_tiles, need(fit_tm, tn, n_tiles)
        if best is None or fit_tm > best[0]:
            best = (fit_tm, tn, n_tiles, need(fit_tm, tn, n_tiles))
    if best is not None:
        return best

    # Last resort (should not trigger with sane budgets): smallest tiles.
    tn = tn_cands[-1]
    tm = tm_cands[-1]
    return tm, tn, D // tn, need(tm, tn, D // tn)


# ----------------------------------------------------------------------------- wrapper


def normalized_residual_block(x, gamma, beta, w, b, *, mxu_dtype=jnp.bfloat16,
                              vmem_budget_bytes=None):
    """Forward of NormalizedResidualBlock with a Linear inner layer.

    x: (B, S, D).  w: (D, D), already transposed so the op is x_norm @ w + b
    (torch Linear stores (out, in) and computes x @ W^T).
    """
    B, S, D = x.shape
    M = B * S
    assert M % 8 == 0, "batch*seq must be a multiple of 8 (sublane width)"

    w = w.astype(mxu_dtype)
    w_el = jnp.dtype(mxu_dtype).itemsize
    x_el = jnp.dtype(x.dtype).itemsize

    vmem_cap = _vmem_capacity_bytes()
    if vmem_budget_bytes is None:
        # ~100 MiB working budget on 128 MiB parts (v5e/v6e), ~44 MiB on v7x.
        vmem_budget_bytes = min(100 * _MIB, vmem_cap - 20 * _MIB)
    budget = max(8 * _MIB, min(int(vmem_budget_bytes), vmem_cap - 16 * _MIB))

    tm, tn, n_tiles, vmem_need = _select_tiles(M, D, x_el, x_el, w_el, budget)

    x2 = x.reshape(M, D)
    gamma2 = gamma.reshape(1, D)
    beta2 = beta.reshape(1, D)
    b2 = b.reshape(1, D)

    compiler_kwargs = {}
    if vmem_need > 12 * _MIB:
        compiler_kwargs["vmem_limit_bytes"] = int(
            min(vmem_cap - 16 * _MIB, vmem_need + 8 * _MIB))

    if n_tiles == 1:
        # Full-weight-resident path: 1-D grid, no N loop, single-buffered W
        # (the constant block is DMA'd exactly once and reused by every i).
        w_idx = lambda i: (0, 0)
        try:
            w_spec = pl.BlockSpec((D, D), w_idx, pipeline_mode=pl.Buffered(1))
        except TypeError:  # older jax without pipeline_mode kwarg
            w_spec = pl.BlockSpec((D, D), w_idx)
        grid_spec = pltpu.PrefetchScalarGridSpec(
            num_scalar_prefetch=0,
            grid=(M // tm,),
            in_specs=[
                pl.BlockSpec((tm, D), lambda i: (i, 0)),    # x rows
                pl.BlockSpec((1, D), lambda i: (0, 0)),     # gamma
                pl.BlockSpec((1, D), lambda i: (0, 0)),     # beta
                w_spec,                                      # W^T (D, D)
                pl.BlockSpec((1, D), lambda i: (0, 0)),     # bias
            ],
            out_specs=pl.BlockSpec((tm, D), lambda i: (i, 0)),
        )
        kernel = _nrb_kernel_full
        compiler_kwargs["dimension_semantics"] = ("parallel",)
        args = (x2, gamma2, beta2, w, b2)
    else:
        # N-tiled weight: rows outer (sharded across cores), N tiles inner so
        # the x row block and the LN scratch stay resident across j.
        grid_spec = pltpu.PrefetchScalarGridSpec(
            num_scalar_prefetch=0,
            grid=(M // tm, n_tiles),
            in_specs=[
                pl.BlockSpec((tm, D), lambda i, j: (i, 0)),   # x rows (full K)
                pl.BlockSpec((tm, tn), lambda i, j: (i, j)),  # residual view
                pl.BlockSpec((1, D), lambda i, j: (0, 0)),    # gamma
                pl.BlockSpec((1, D), lambda i, j: (0, 0)),    # beta
                pl.BlockSpec((D, tn), lambda i, j: (0, j)),   # W^T tile
                pl.BlockSpec((1, tn), lambda i, j: (0, j)),   # bias tile
            ],
            out_specs=pl.BlockSpec((tm, tn), lambda i, j: (i, j)),
            scratch_shapes=[pltpu.VMEM((tm, D), mxu_dtype)],  # hoisted LN out
        )
        kernel = _nrb_kernel_tiled
        # j must be "arbitrary": the LN scratch written at j==0 is carried
        # across the inner N-tile loop; i stays "parallel" for megacore.
        compiler_kwargs["dimension_semantics"] = ("parallel", "arbitrary")
        args = (x2, x2, gamma2, beta2, w, b2)

    out2 = pl.pallas_call(
        kernel,
        out_shape=jax.ShapeDtypeStruct((M, D), x.dtype),
        grid_spec=grid_spec,
        compiler_params=pltpu.CompilerParams(**compiler_kwargs),
    )(*args)

    return out2.reshape(B, S, D)


# ----------------------------------------------------------------------------- test


def _reference(x, gamma, beta, w, b):
    xf = x.astype(jnp.float32)
    mean = jnp.mean(xf, axis=-1, keepdims=True)
    var = jnp.mean((xf - mean) ** 2, axis=-1, keepdims=True)
    xn = (xf - mean) * lax.rsqrt(var + LN_EPS) * gamma + beta
    y = xn @ w.astype(jnp.float32) + b
    return (xf + y).astype(x.dtype)


if __name__ == "__main__":
    B, S, D = 2, 8, 32
    key = jax.random.PRNGKey(0)
    kx, kw, kb = jax.random.split(key, 3)

    x = jax.random.normal(kx, (B, S, D), dtype=jnp.float32)

    # LayerNorm default params (gamma=1, beta=0); Linear with small weights.
    gamma = jnp.ones((D,), dtype=jnp.float32)
    beta = jnp.zeros((D,), dtype=jnp.float32)
    # PyTorch Linear stores W as (out, in) and computes x @ W^T; we pass W^T.
    w_t = jax.random.normal(kw, (D, D), dtype=jnp.float32) * (1.0 / D ** 0.5)
    b = jax.random.normal(kb, (D,), dtype=jnp.float32) * 0.01

    ref = _reference(x, gamma, beta, w_t, b)

    # Verification path: f32 MXU inputs -> matches the f32 reference tightly.
    out_f32 = jax.block_until_ready(
        normalized_residual_block(x, gamma, beta, w_t, b, mxu_dtype=jnp.float32))
    assert out_f32.shape == (B, S, D)
    assert jnp.allclose(out_f32, ref, atol=1e-4, rtol=1e-4)

    # Default (perf) path: bf16 MXU inputs, f32 accumulate -> looser tolerance.
    out_bf16 = jax.block_until_ready(
        normalized_residual_block(x, gamma, beta, w_t, b))
    assert out_bf16.shape == (B, S, D)
    assert jnp.allclose(out_bf16, ref, atol=3e-2, rtol=3e-2)

    print("KERNEL_OK")
</pallas_src>

<mosaic_0001>
module attributes {stable_mosaic.version = 11 : i64} {
  func.func @_nrb_kernel_full(%arg0: i32, %arg1: memref<16x32xf32, #tpu.memory_space<vmem>>, %arg2: memref<1x32xf32, #tpu.memory_space<vmem>>, %arg3: memref<1x32xf32, #tpu.memory_space<vmem>>, %arg4: memref<32x32xf32, #tpu.memory_space<vmem>>, %arg5: memref<1x32xf32, #tpu.memory_space<vmem>>, %arg6: memref<16x32xf32, #tpu.memory_space<vmem>>) attributes {dimension_semantics = [#tpu.dimension_semantics<parallel>], iteration_bounds = array<i64: 1>, scalar_prefetch = 0 : i64, scratch_operands = 0 : i64, tpu.core_type = #tpu.core_type<tc>, window_params = [{transform_indices = @transform_0, window_bounds = array<i64: 16, 32>}, {pipeline_mode = #tpu.pipeline_mode<synchronous>, transform_indices = @transform_1, window_bounds = array<i64: 1, 32>}, {pipeline_mode = #tpu.pipeline_mode<synchronous>, transform_indices = @transform_2, window_bounds = array<i64: 1, 32>}, {pipeline_mode = #tpu.pipeline_mode<synchronous>, transform_indices = @transform_3, window_bounds = array<i64: 32, 32>}, {pipeline_mode = #tpu.pipeline_mode<synchronous>, transform_indices = @transform_4, window_bounds = array<i64: 1, 32>}, {transform_indices = @transform_5, window_bounds = array<i64: 16, 32>}]} {
    %c0 = arith.constant 0 : index
    %c0_0 = arith.constant 0 : index
    %0 = vector.load %arg1[%c0, %c0_0] : memref<16x32xf32, #tpu.memory_space<vmem>>, vector<16x32xf32>
    %c0_1 = arith.constant 0 : index
    %c0_2 = arith.constant 0 : index
    %1 = vector.load %arg2[%c0_1, %c0_2] : memref<1x32xf32, #tpu.memory_space<vmem>>, vector<1x32xf32>
    %c0_3 = arith.constant 0 : index
    %c0_4 = arith.constant 0 : index
    %2 = vector.load %arg3[%c0_3, %c0_4] : memref<1x32xf32, #tpu.memory_space<vmem>>, vector<1x32xf32>
    %cst = arith.constant dense<0.000000e+00> : vector<16xf32>
    %3 = vector.multi_reduction <add>, %0, %cst [1] : vector<16x32xf32> to vector<16xf32>
    %4 = vector.shape_cast %3 : vector<16xf32> to vector<16x1xf32>
    %cst_5 = arith.constant 3.125000e-02 : f32
    %5 = vector.broadcast %cst_5 : f32 to vector<16x1xf32>
    %6 = arith.mulf %4, %5 : vector<16x1xf32>
    %7 = vector.broadcast %6 : vector<16x1xf32> to vector<16x32xf32>
    %8 = arith.subf %0, %7 : vector<16x32xf32>
    %9 = arith.mulf %8, %8 : vector<16x32xf32>
    %cst_6 = arith.constant dense<0.000000e+00> : vector<16xf32>
    %10 = vector.multi_reduction <add>, %9, %cst_6 [1] : vector<16x32xf32> to vector<16xf32>
    %11 = vector.shape_cast %10 : vector<16xf32> to vector<16x1xf32>
    %cst_7 = arith.constant 3.125000e-02 : f32
    %12 = vector.broadcast %cst_7 : f32 to vector<16x1xf32>
    %13 = arith.mulf %11, %12 : vector<16x1xf32>
    %cst_8 = arith.constant 9.99999974E-6 : f32
    %14 = vector.broadcast %cst_8 : f32 to vector<16x1xf32>
    %15 = arith.addf %13, %14 : vector<16x1xf32>
    %16 = math.rsqrt %15 : vector<16x1xf32>
    %17 = vector.broadcast %16 : vector<16x1xf32> to vector<16x32xf32>
    %18 = arith.mulf %8, %17 : vector<16x32xf32>
    %19 = vector.broadcast %1 : vector<1x32xf32> to vector<16x32xf32>
    %20 = arith.mulf %18, %19 : vector<16x32xf32>
    %21 = vector.broadcast %2 : vector<1x32xf32> to vector<16x32xf32>
    %22 = arith.addf %20, %21 : vector<16x32xf32>
    %c0_9 = arith.constant 0 : index
    %c0_10 = arith.constant 0 : index
    %23 = vector.load %arg4[%c0_9, %c0_10] : memref<32x32xf32, #tpu.memory_space<vmem>>, vector<32x32xf32>
    %cst_11 = arith.constant dense<0.000000e+00> : vector<16x32xf32>
    %24 = tpu.matmul %22, %23, %cst_11 {dimension_numbers = #tpu.dot_dimension_numbers<[1], [0], [0], [1], [0, 0, 1, 1], [], []>} : vector<16x32xf32>, vector<32x32xf32>, vector<16x32xf32> -> vector<16x32xf32>
    %c0_12 = arith.constant 0 : index
    %c0_13 = arith.constant 0 : index
    %25 = vector.load %arg5[%c0_12, %c0_13] : memref<1x32xf32, #tpu.memory_space<vmem>>, vector<1x32xf32>
    %26 = vector.broadcast %25 : vector<1x32xf32> to vector<16x32xf32>
    %27 = arith.addf %24, %26 : vector<16x32xf32>
    %28 = arith.addf %0, %27 : vector<16x32xf32>
    %c0_14 = arith.constant 0 : index
    %c0_15 = arith.constant 0 : index
    %29 = vector.load %arg6[%c0_14, %c0_15] : memref<16x32xf32, #tpu.memory_space<vmem>>, vector<16x32xf32>
    tpu.vector_store %arg6[%c0_14, %c0_15], %28 {strides = array<i32>} : memref<16x32xf32, #tpu.memory_space<vmem>>, vector<16x32xf32>,
    return
  }
  func.func @transform_0(%arg0: i32) -> (i32, i32) {
    %c0_i32 = arith.constant 0 : i32
    %c0_i32_0 = arith.constant 0 : i32
    return %arg0, %c0_i32 : i32, i32
  }
  func.func @transform_1(%arg0: i32) -> (i32, i32) {
    %c0_i32 = arith.constant 0 : i32
    %c0_i32_0 = arith.constant 0 : i32
    %c0_i32_1 = arith.constant 0 : i32
    return %c0_i32, %c0_i32_0 : i32, i32
  }
  func.func @transform_2(%arg0: i32) -> (i32, i32) {
    %c0_i32 = arith.constant 0 : i32
    %c0_i32_0 = arith.constant 0 : i32
    %c0_i32_1 = arith.constant 0 : i32
    return %c0_i32, %c0_i32_0 : i32, i32
  }
  func.func @transform_3(%arg0: i32) -> (i32, i32) {
    %c0_i32 = arith.constant 0 : i32
    %c0_i32_0 = arith.constant 0 : i32
    %c0_i32_1 = arith.constant 0 : i32
    return %c0_i32, %c0_i32_0 : i32, i32
  }
  func.func @transform_4(%arg0: i32) -> (i32, i32) {
    %c0_i32 = arith.constant 0 : i32
    %c0_i32_0 = arith.constant 0 : i32
    %c0_i32_1 = arith.constant 0 : i32
    return %c0_i32, %c0_i32_0 : i32, i32
  }
  func.func @transform_5(%arg0: i32) -> (i32, i32) {
    %c0_i32 = arith.constant 0 : i32
    %c0_i32_0 = arith.constant 0 : i32
    return %arg0, %c0_i32 : i32, i32
  }
}

</mosaic_0001>

<bundles_post_ra>
// kernel: tpu_custom_call.1
= control target key start
LH: loop header
LB: loop body
LE: loop exit
PB: predicated region body
PF: predicated region fallthrough
CT: control target
= control target key end

     0   :  { %10 = vsyncpa [#allocation3], 0  ;;  %s418_s0 = inlined_call_operand.hbm [shape: f32[16,32], index: 0, kind: input, shape index: {}]   ;;  %s419_s1 = inlined_call_operand.vmem [shape: f32[1,32], index: 1, kind: input, shape index: {}]   ;;  %s420_s2 = inlined_call_operand.vmem [shape: f32[1,32], index: 2, kind: input, shape index: {}]   ;;  %s421_s3 = inlined_call_operand.hbm [shape: f32[32,32], index: 3, kind: input, shape index: {}]   ;;  %s422_s4 = inlined_call_operand.vmem [shape: f32[1,32], index: 4, kind: input, shape index: {}]   ;;  %s423_s5 = inlined_call_operand.hbm [shape: f32[16,32], index: 5, kind: output, shape index: {}]  }
   0x1   :  { %11 = vsyncpa [#allocation6], 0 }
   0x2   :  { %12 = vsyncpa [#allocation4], 0  ;;  %s321_s18 = smov [#allocation2]   ;;  %s249_s22 = scalar_lea.hbm %s418_s0, 256 }
   0x3   :  { %s18_s19 = sshll.u32 %s321_s18, 4  ;;  %p250_p0 = scmp.ne.s32.totalorder %s418_s0, %s249_s22  ;;  %s19_s19 = int_to_ptr.vmem [resolvable:$true] %s18_s19 }
   0x4   :  { %p253_p1 = scmp.lt.u32.totalorder %s249_s22, %s418_s0 }
   0x6   :  { %p255_p2 = pnand %p253_p1, %p250_p0 }
   0x8   :  { %258 = shalt.err (!%p255_p2)
}
   0x9   :  { %s259_s27 = scalar_lea.vmem %s19_s19, 256  ;;  %p264_p4 = scmp.lt.s32.totalorder %s19_s19, %s19_s19 }
   0xa   :  { %p260_p3 = scmp.ne.s32.totalorder %s19_s19, %s259_s27  ;;  %p265_p5 = scmp.lt.s32.totalorder %s259_s27, %s259_s27 }
   0xc   :  { %p266_p6 = por %p265_p5, %p264_p4 }
   0xe   :  { %p267_p7 = pnand %p266_p6, %p260_p3 }
  0x10   :  { %270 = shalt.err (!%p267_p7)
}
  0x11   :  { %s322_s28 = smov 128   ;;  %s323_s29 = smov 8  }
  0x12   :  { %24 = dma.hbm_to_vmem [thread:$0]  %s418_s0, 256, %s19_s19, [#allocation3], %s322_s28, %s322_s28, %s323_s29  }
  0x13   :  { %s324_s7 = smov [#allocation5]   ;;  %s271_s11 = scalar_lea.hbm %s421_s3, 512 }
  0x14   :  { %s34_s8 = sshll.u32 %s324_s7, 4  ;;  %p272_p8 = scmp.ne.s32.totalorder %s421_s3, %s271_s11  ;;  %s35_s8 = int_to_ptr.vmem [resolvable:$true] %s34_s8 }
  0x15   :  { %p275_p9 = scmp.lt.u32.totalorder %s271_s11, %s421_s3 }
  0x17   :  { %p277_p10 = pnand %p275_p9, %p272_p8 }
  0x19   :  { %280 = shalt.err (!%p277_p10)
}
  0x1a   :  { %s281_s16 = scalar_lea.vmem %s35_s8, 512  ;;  %p286_p12 = scmp.lt.s32.totalorder %s35_s8, %s35_s8 }
  0x1b   :  { %p282_p11 = scmp.ne.s32.totalorder %s35_s8, %s281_s16  ;;  %p287_p13 = scmp.lt.s32.totalorder %s281_s16, %s281_s16 }
  0x1d   :  { %p288_p0 = por %p287_p13, %p286_p12 }
  0x1f   :  { %p289_p1 = pnand %p288_p0, %p282_p11 }
  0x21   :  { %292 = shalt.err (!%p289_p1)
}
  0x22   :  { %40 = dma.hbm_to_vmem [thread:$0]  %s421_s3, 512, %s35_s8, [#allocation6], %s322_s28, %s322_s28, %s323_s29  }
  0x23   :  { %315 = dma.done.wait [#allocation3], 256  }
  0x24   :  { %316 = vsyncadd [#allocation3], 4294967040 }
  0x25   :  { %317 = dma.done.wait [#allocation6], 512  }
  0x26   :  { %318 = vsyncadd [#allocation6], 4294966784  ;;  %vm53_vm0 = vcmask 261120   ;;  %v49_v0 = vld [vmem:[#allocation2] sm:$0xff]  ;;  %v50_v1 = vld [vmem:[#allocation2 + $0x8] sm:$0xff] }
  0x27   :  { %v54_v2 = vsel %vm53_vm0, %v49_v0, 0.0  ;;  %v57_v3 = vsel %vm53_vm0, %v50_v1, 0.0  ;;  %v96_v14 = vld [vmem:[#allocation5] sm:$0xff]  ;;  %v97_v15 = vld [vmem:[#allocation5 + $0x8] sm:$0xff]  ;;  %v98_v16 = vld [vmem:[#allocation5 + $0x10] sm:$0xff] }
  0x28   :  { %55 = vadd.xlane.f32.xlu0 %v54_v2  ;;  %v232_v17 = vpack.c.bf16 %v97_v15, %v96_v14  ;;  %v99_v18 = vld [vmem:[#allocation5 + $0x18] sm:$0xff]  ;;  %v210_v27 = vld [vmem:[%s419_s1] ss:$0 sm:$0xff]  ;;  %s325_s1 = smov [#allocation7]  }
  0x29   :  { %v236_v19 = vpack.c.bf16 %v99_v18, %v98_v16  ;;  %v211_v29 = vld [vmem:[%s420_s2] ss:$0 sm:$0xff]  ;;  %s197_s23 = sshll.u32 %s325_s1, 4  ;;  %s198_s23 = int_to_ptr.vmem [resolvable:$true] %s197_s23 }
  0x2a   :  { %233 = vmatprep.subr.bf16.mxu0 %v232_v17  ;;  %v212_v36 = vld [vmem:[%s422_s4] ss:$0 sm:$0xff]  ;;  %s293_s2 = scalar_lea.vmem %s198_s23, 256  ;;  %p298_p3 = scmp.lt.s32.totalorder %s198_s23, %s198_s23 }
  0x2b   :  { %235 = vmatpush3.bf16.msra.mxu0 %v232_v17  ;;  %p294_p2 = scmp.ne.s32.totalorder %s198_s23, %s293_s2  ;;  %p299_p4 = scmp.lt.s32.totalorder %s293_s2, %s293_s2 }
  0x2c   :  { %58 = vadd.xlane.f32.xlu0 %v57_v3  ;;  %237 = vmatprep.subr.bf16.mxu0 %v236_v19 }
  0x2d   :  { %p300_p5 = por %p299_p4, %p298_p3 }
  0x2f   :  { %239 = vmatpush3.bf16.msra.mxu0 %v236_v19  ;;  %p301_p6 = pnand %p300_p5, %p294_p2 }
  0xb5   :  { %v56_v4 = vpop.xlane.xlu0 %55 }
  0xb6   :  { %v60_v5 = vmul.f32 0.03125, %v56_v4 }
  0xb8   :  { %v62_v6 = vsub.f32 %v49_v0, %v60_v5 }
  0xb9   :  { %v59_v7 = vpop.xlane.xlu0 %58 }
  0xba   :  { %v61_v8 = vmul.f32 0.03125, %v59_v7  ;;  %v64_v9 = vmul.f32 %v62_v6, %v62_v6 }
  0xbc   :  { %v63_v10 = vsub.f32 %v50_v1, %v61_v8  ;;  %v66_v11 = vsel %vm53_vm0, %v64_v9, 0.0 }
  0xbd   :  { %67 = vadd.xlane.f32.xlu1 %v66_v11 }
  0xbe   :  { %v65_v12 = vmul.f32 %v63_v10, %v63_v10 }
  0xc0   :  { %v69_v13 = vsel %vm53_vm0, %v65_v12, 0.0 }
  0xc1   :  { %70 = vadd.xlane.f32.xlu1 %v69_v13 }
 0x14a   :  { %v68_v20 = vpop.xlane.xlu1 %67 }
 0x14b   :  { %v72_v21 = vmul.f32 0.03125, %v68_v20 }
 0x14d   :  { %v74_v22 = vadd.f32 1e-05, %v72_v21 }
 0x14e   :  { %v71_v23 = vpop.xlane.xlu1 %70 }
 0x14f   :  { %245 = vrsqrt.f32 %v74_v22  ;;  %v73_v24 = vmul.f32 0.03125, %v71_v23 }
 0x151   :  { %v75_v25 = vadd.f32 1e-05, %v73_v24 }
 0x153   :  { %247 = vrsqrt.f32 %v75_v25 }
 0x159   :  { %v246_v26 = vpop.eup %245 }
 0x15a   :  { %v78_v28 = vmul.f32 %v246_v26, %v62_v6 }
 0x15c   :  { %v86_v30 = vmul.f32 %v210_v27, %v78_v28 }
 0x15d   :  { %v248_v31 = vpop.eup %247 }
 0x15e   :  { %v79_v32 = vmul.f32 %v248_v31, %v63_v10  ;;  %v94_v33 = vadd.f32 %v211_v29, %v86_v30 }
 0x160   :  { %v87_v34 = vmul.f32 %v210_v27, %v79_v32  ;;  %229 = vmatprep.mubr.msk.f32.mxu0 %vm53_vm0, %v94_v33 }
 0x162   :  { %v95_v35 = vadd.f32 %v211_v29, %v87_v34 }
 0x164   :  { %230 = vmatmul.mubr.msk.f32.vlgmr.msra.gmra.mrb[0].mxu0 %vm53_vm0, %v95_v35 }
 0x237   :  { %v231_v37 = vpop.f32.mrb[0].mxu0 }
 0x238   :  { %v185_v38 = vadd.f32 %v231_v37, %v212_v36  ;;  %v179_v39 = vpop.f32.mrb[1].mxu0 }
 0x239   :  { %v180_v40 = vadd.f32 %v212_v36, %v179_v39 }
 0x23a   :  { %v189_v41 = vadd.f32 %v185_v38, %v50_v1 }
 0x23b   :  { %v188_v42 = vadd.f32 %v180_v40, %v49_v0 }
 0x23c   :  { %191 = vst.msk [vmem:[#allocation7 + $0x8] sm:$0xff] %vm53_vm0, %v189_v41 }
 0x23d   :  { %190 = vst.msk [vmem:[#allocation7] sm:$0xff] %vm53_vm0, %v188_v42 }
 0x23e   :  { %304 = shalt.err (!%p301_p6)
}
 0x23f   :  { %s305_s25 = scalar_lea.hbm %s423_s5, 256 }
 0x240   :  { %p306_p7 = scmp.ne.s32.totalorder %s423_s5, %s305_s25  ;;  %p309_p8 = scmp.lt.u32.totalorder %s305_s25, %s423_s5 }
 0x242   :  { %p311_p9 = pnand %p309_p8, %p306_p7 }
 0x244   :  { %314 = shalt.err (!%p311_p9)
}
 0x245   :  { %203 = dma.vmem_to_hbm [thread:$0]  %s198_s23, 256, %s423_s5, [#allocation4], %s322_s28, %s322_s28, %s323_s29  }
 0x246   :  { %319 = dma.done.wait [#allocation4], 256  }
 0x247   :  { %320 = vsyncadd [#allocation4], 4294967040 }
 0x248   :  { %207 = vsyncpa [#allocation3], 1 }
 0x249   :  { %208 = vsyncpa [#allocation6], 1 }
 0x24a   :  { %209 = vsyncpa [#allocation4], 1 }

</bundles_post_ra>
